<compile_context>
chip_gen: v6e
topology: v6e:2x2x1
jax: 0.10.0
libtpu: 0.0.40
codegen_flags: <defaults>
</compile_context>

<pallas_src>
import functools

import jax
import jax.numpy as jnp
from jax import lax
from jax.experimental import pallas as pl
from jax.experimental.pallas import tpu as pltpu


def _bottleneck_kernel(x_ref, s1_ref, sh1_ref, w1f_ref, sh2_ref, w2f_ref, mask_ref,
                       o_ref, col_ref, *, W, Cm, G):
    # x_ref:   (1, Cin, HW) f32   -- one image, channel-major, spatial flattened on lanes
    # s1/sh1:  (Cin, 1) f32       -- BN1 scale / shift
    # w1f:     (Cm, Cin) bf16     -- conv1 weight with BN2 scale folded in
    # sh2:     (Cm, 1) f32        -- BN2 shift
    # w2f:     (G, 9*Cm) bf16     -- conv2 weight, tap-major, matching im2col rows
    # mask:    (9, 1, HW) f32     -- per-tap border-validity masks
    # o_ref:   (1, G+Cin, HW) f32 -- final concatenated output block
    # col_ref: (9*Cm, HW) bf16    -- im2col VMEM scratch
    HW = x_ref.shape[-1]
    x = x_ref[0]                                                    # (Cin, HW) f32

    # BN1 + ReLU (per-channel scale/shift, lane-broadcast).
    h = jnp.maximum(x * s1_ref[...] + sh1_ref[...], 0.0)

    # 1x1 conv (BN2 scale pre-folded) + BN2 shift + ReLU  -> (Cm, HW) f32.
    y1 = jnp.dot(w1f_ref[...], h.astype(jnp.bfloat16),
                 preferred_element_type=jnp.float32)
    act = jnp.maximum(y1 + sh2_ref[...], 0.0)

    # im2col for the 3x3 / pad=1 conv: 9 lane-rolls (XLU) + border masks -> VMEM scratch.
    for t in range(9):
        ky, kx = t // 3 - 1, t % 3 - 1
        f = ky * W + kx                                             # flat spatial shift
        shifted = pltpu.roll(act, (-f) % HW, axis=1) if f else act  # shifted[p] = act[p + f]
        col_ref[t * Cm:(t + 1) * Cm, :] = (shifted * mask_ref[t]).astype(jnp.bfloat16)

    # Single MXU matmul, K = 9*Cm, lane-dense (G, HW) f32 result.
    out = jnp.dot(w2f_ref[...], col_ref[...], preferred_element_type=jnp.float32)

    # torch.cat([conv_out, x], dim=1) written directly in the final channel-major layout.
    o_ref[0, :G, :] = out
    o_ref[0, G:, :] = x


def bottleneck_forward(x_nchw, params, *, growth_rate):
    g1, b1, m1, v1, w1, g2, b2, m2, v2, w2 = params
    eps = 1e-5
    N, Cin, H, W = x_nchw.shape
    Cm = 4 * growth_rate
    G = growth_rate
    HW = H * W
    assert HW % 128 == 0, "H*W must be a multiple of 128 (lane axis)"

    # NCHW is already channel-major: just flatten spatial (free reshape, no transpose).
    x2d = x_nchw.astype(jnp.float32).reshape(N, Cin, HW)

    # Fold inference-mode BN into per-channel scale/shift; fold BN2's scale into conv1.
    inv1 = g1 / jnp.sqrt(v1 + eps)
    s1 = inv1.reshape(Cin, 1).astype(jnp.float32)
    sh1 = (b1 - m1 * inv1).reshape(Cin, 1).astype(jnp.float32)
    inv2 = g2 / jnp.sqrt(v2 + eps)
    w1f = (w1 * inv2[None, :]).T.astype(jnp.bfloat16)          # (Cm, Cin) = inv2[cm]*w1[cin,cm]
    sh2 = (b2 - m2 * inv2).reshape(Cm, 1).astype(jnp.float32)
    # conv2 weight (3,3,Cm,G) -> (G, 9*Cm), tap-major, matching im2col row layout.
    w2f = jnp.transpose(w2, (3, 0, 1, 2)).reshape(G, 9 * Cm).astype(jnp.bfloat16)

    # Per-tap border-validity masks over the flattened spatial axis.
    yy = jnp.arange(H)
    xx = jnp.arange(W)
    masks = []
    for ky in (-1, 0, 1):
        for kx in (-1, 0, 1):
            my = (yy + ky >= 0) & (yy + ky < H)
            mx = (xx + kx >= 0) & (xx + kx < W)
            masks.append((my[:, None] & mx[None, :]).reshape(1, HW))
    masks = jnp.stack(masks, axis=0).astype(jnp.float32)       # (9, 1, HW)

    kernel = functools.partial(_bottleneck_kernel, W=W, Cm=Cm, G=G)
    out = pl.pallas_call(
        kernel,
        out_shape=jax.ShapeDtypeStruct((N, G + Cin, HW), jnp.float32),
        grid_spec=pltpu.PrefetchScalarGridSpec(
            num_scalar_prefetch=0,
            grid=(N,),
            in_specs=[
                pl.BlockSpec((1, Cin, HW), lambda n: (n, 0, 0)),   # x (per image)
                pl.BlockSpec((Cin, 1), lambda n: (0, 0)),          # s1
                pl.BlockSpec((Cin, 1), lambda n: (0, 0)),          # sh1
                pl.BlockSpec((Cm, Cin), lambda n: (0, 0)),         # w1f (bf16)
                pl.BlockSpec((Cm, 1), lambda n: (0, 0)),           # sh2
                pl.BlockSpec((G, 9 * Cm), lambda n: (0, 0)),       # w2f (bf16)
                pl.BlockSpec((9, 1, HW), lambda n: (0, 0, 0)),     # border masks
            ],
            out_specs=pl.BlockSpec((1, G + Cin, HW), lambda n: (n, 0, 0)),
            scratch_shapes=[pltpu.VMEM((9 * Cm, HW), jnp.bfloat16)],
        ),
        compiler_params=pltpu.CompilerParams(
            dimension_semantics=("parallel",),
            vmem_limit_bytes=32 * 1024 * 1024,
        ),
    )(x2d, s1, sh1, w1f, sh2, w2f, masks)

    return out.reshape(N, G + Cin, H, W)


def bottleneck_reference(x_nchw, params, *, growth_rate):
    """Pure-JAX fp32 reference (lax convs) for correctness checking."""
    g1, b1, m1, v1, w1, g2, b2, m2, v2, w2 = params
    eps = 1e-5

    def bn(x, g, b, m, v):
        inv = g / jnp.sqrt(v + eps)
        return x * inv[None, :, None, None] + (b - m * inv)[None, :, None, None]

    w1_oihw = jnp.transpose(w1, (1, 0))[:, :, None, None]      # (Cm, Cin, 1, 1)
    w2_oihw = jnp.transpose(w2, (3, 2, 0, 1))                  # (G, Cm, 3, 3)
    h = jax.nn.relu(bn(x_nchw, g1, b1, m1, v1))
    y1 = lax.conv_general_dilated(h, w1_oihw, (1, 1), 'VALID',
                                  dimension_numbers=('NCHW', 'OIHW', 'NCHW'))
    h2 = jax.nn.relu(bn(y1, g2, b2, m2, v2))
    y2 = lax.conv_general_dilated(h2, w2_oihw, (1, 1), ((1, 1), (1, 1)),
                                  dimension_numbers=('NCHW', 'OIHW', 'NCHW'))
    return jnp.concatenate([y2, x_nchw], axis=1)


if __name__ == "__main__":
    N, Cin, H, W = 2, 4, 16, 16
    growth_rate = 8
    Cm = 4 * growth_rate

    key = jax.random.PRNGKey(0)
    ks = jax.random.split(key, 11)
    x = jax.random.normal(ks[0], (N, Cin, H, W), jnp.float32)

    g1 = 1.0 + 0.1 * jax.random.normal(ks[1], (Cin,), jnp.float32)
    b1 = 0.1 * jax.random.normal(ks[2], (Cin,), jnp.float32)
    m1 = 0.05 * jax.random.normal(ks[3], (Cin,), jnp.float32)
    v1 = jax.random.uniform(ks[4], (Cin,), jnp.float32, minval=0.5, maxval=1.5)
    w1 = jax.random.normal(ks[5], (Cin, Cm), jnp.float32) / jnp.sqrt(Cin)

    g2 = 1.0 + 0.1 * jax.random.normal(ks[6], (Cm,), jnp.float32)
    b2 = 0.1 * jax.random.normal(ks[7], (Cm,), jnp.float32)
    m2 = 0.05 * jax.random.normal(ks[8], (Cm,), jnp.float32)
    v2 = jax.random.uniform(ks[9], (Cm,), jnp.float32, minval=0.5, maxval=1.5)
    w2 = jax.random.normal(ks[10], (3, 3, Cm, growth_rate), jnp.float32) / jnp.sqrt(9 * Cm)

    params = (g1, b1, m1, v1, w1, g2, b2, m2, v2, w2)

    out = jax.block_until_ready(bottleneck_forward(x, params, growth_rate=growth_rate))
    ref = jax.block_until_ready(bottleneck_reference(x, params, growth_rate=growth_rate))

    assert out.shape == (N, growth_rate + Cin, H, W), out.shape
    max_err = float(jnp.max(jnp.abs(out - ref)))
    # bf16 MXU operands (f32 accumulation) vs fp32 reference -> relaxed tolerance.
    assert jnp.allclose(out, ref, rtol=5e-2, atol=5e-2), f"max abs err = {max_err}"
    print("KERNEL_OK")
</pallas_src>

<mosaic_0001>
module attributes {stable_mosaic.version = 11 : i64} {
  func.func @_bottleneck_kernel(%arg0: i32, %arg1: memref<1x4x256xf32, #tpu.memory_space<vmem>>, %arg2: memref<4x1xf32, #tpu.memory_space<vmem>>, %arg3: memref<4x1xf32, #tpu.memory_space<vmem>>, %arg4: memref<32x4xbf16, #tpu.memory_space<vmem>>, %arg5: memref<32x1xf32, #tpu.memory_space<vmem>>, %arg6: memref<8x288xbf16, #tpu.memory_space<vmem>>, %arg7: memref<9x1x256xf32, #tpu.memory_space<vmem>>, %arg8: memref<1x12x256xf32, #tpu.memory_space<vmem>>, %arg9: memref<288x256xbf16, #tpu.memory_space<vmem>>) attributes {dimension_semantics = [#tpu.dimension_semantics<parallel>], iteration_bounds = array<i64: 2>, scalar_prefetch = 0 : i64, scratch_operands = 1 : i64, tpu.core_type = #tpu.core_type<tc>, window_params = [{transform_indices = @transform_0, window_bounds = array<i64: 1, 4, 256>}, {pipeline_mode = #tpu.pipeline_mode<synchronous>, transform_indices = @transform_1, window_bounds = array<i64: 4, 1>}, {pipeline_mode = #tpu.pipeline_mode<synchronous>, transform_indices = @transform_2, window_bounds = array<i64: 4, 1>}, {pipeline_mode = #tpu.pipeline_mode<synchronous>, transform_indices = @transform_3, window_bounds = array<i64: 32, 4>}, {pipeline_mode = #tpu.pipeline_mode<synchronous>, transform_indices = @transform_4, window_bounds = array<i64: 32, 1>}, {pipeline_mode = #tpu.pipeline_mode<synchronous>, transform_indices = @transform_5, window_bounds = array<i64: 8, 288>}, {pipeline_mode = #tpu.pipeline_mode<synchronous>, transform_indices = @transform_6, window_bounds = array<i64: 9, 1, 256>}, {transform_indices = @transform_7, window_bounds = array<i64: 1, 12, 256>}]} {
    %c0 = arith.constant 0 : index
    %c0_0 = arith.constant 0 : index
    %c0_1 = arith.constant 0 : index
    %0 = vector.load %arg1[%c0, %c0_0, %c0_1] : memref<1x4x256xf32, #tpu.memory_space<vmem>>, vector<1x4x256xf32>
    %1 = vector.shape_cast %0 : vector<1x4x256xf32> to vector<4x256xf32>
    %c0_2 = arith.constant 0 : index
    %c0_3 = arith.constant 0 : index
    %2 = vector.load %arg2[%c0_2, %c0_3] : memref<4x1xf32, #tpu.memory_space<vmem>>, vector<4x1xf32>
    %3 = vector.broadcast %2 : vector<4x1xf32> to vector<4x256xf32>
    %4 = arith.mulf %1, %3 : vector<4x256xf32>
    %c0_4 = arith.constant 0 : index
    %c0_5 = arith.constant 0 : index
    %5 = vector.load %arg3[%c0_4, %c0_5] : memref<4x1xf32, #tpu.memory_space<vmem>>, vector<4x1xf32>
    %6 = vector.broadcast %5 : vector<4x1xf32> to vector<4x256xf32>
    %7 = arith.addf %4, %6 : vector<4x256xf32>
    %cst = arith.constant 0.000000e+00 : f32
    %8 = vector.broadcast %cst : f32 to vector<4x256xf32>
    %9 = arith.maximumf %7, %8 : vector<4x256xf32>
    %c0_6 = arith.constant 0 : index
    %c0_7 = arith.constant 0 : index
    %10 = vector.load %arg4[%c0_6, %c0_7] : memref<32x4xbf16, #tpu.memory_space<vmem>>, vector<32x4xbf16>
    %11 = arith.truncf %9 : vector<4x256xf32> to vector<4x256xbf16>
    %cst_8 = arith.constant dense<0.000000e+00> : vector<32x256xf32>
    %12 = tpu.matmul %10, %11, %cst_8 {dimension_numbers = #tpu.dot_dimension_numbers<[1], [0], [0], [1], [0, 0, 1, 1], [], []>} : vector<32x4xbf16>, vector<4x256xbf16>, vector<32x256xf32> -> vector<32x256xf32>
    %c0_9 = arith.constant 0 : index
    %c0_10 = arith.constant 0 : index
    %13 = vector.load %arg5[%c0_9, %c0_10] : memref<32x1xf32, #tpu.memory_space<vmem>>, vector<32x1xf32>
    %14 = vector.broadcast %13 : vector<32x1xf32> to vector<32x256xf32>
    %15 = arith.addf %12, %14 : vector<32x256xf32>
    %cst_11 = arith.constant 0.000000e+00 : f32
    %16 = vector.broadcast %cst_11 : f32 to vector<32x256xf32>
    %17 = arith.maximumf %15, %16 : vector<32x256xf32>
    %c17_i32 = arith.constant 17 : i32
    %18 = tpu.dynamic_rotate %17 by %c17_i32 dim 1 : vector<32x256xf32>, i32 -> vector<32x256xf32>
    %c0_12 = arith.constant 0 : index
    %c0_13 = arith.constant 0 : index
    %c0_14 = arith.constant 0 : index
    %19 = vector.load %arg7[%c0_12, %c0_13, %c0_14] : memref<9x1x256xf32, #tpu.memory_space<vmem>>, vector<1x1x256xf32>
    %20 = vector.shape_cast %19 : vector<1x1x256xf32> to vector<1x256xf32>
    %21 = vector.broadcast %20 : vector<1x256xf32> to vector<32x256xf32>
    %22 = arith.mulf %18, %21 : vector<32x256xf32>
    %23 = arith.truncf %22 : vector<32x256xf32> to vector<32x256xbf16>
    %c0_15 = arith.constant 0 : index
    %c0_16 = arith.constant 0 : index
    %24 = vector.load %arg9[%c0_15, %c0_16] : memref<288x256xbf16, #tpu.memory_space<vmem>>, vector<32x256xbf16>
    tpu.vector_store %arg9[%c0_15, %c0_16], %23 {strides = array<i32>} : memref<288x256xbf16, #tpu.memory_space<vmem>>, vector<32x256xbf16>,
    %c16_i32 = arith.constant 16 : i32
    %25 = tpu.dynamic_rotate %17 by %c16_i32 dim 1 : vector<32x256xf32>, i32 -> vector<32x256xf32>
    %c1 = arith.constant 1 : index
    %c0_17 = arith.constant 0 : index
    %c0_18 = arith.constant 0 : index
    %26 = vector.load %arg7[%c1, %c0_17, %c0_18] : memref<9x1x256xf32, #tpu.memory_space<vmem>>, vector<1x1x256xf32>
    %27 = vector.shape_cast %26 : vector<1x1x256xf32> to vector<1x256xf32>
    %28 = vector.broadcast %27 : vector<1x256xf32> to vector<32x256xf32>
    %29 = arith.mulf %25, %28 : vector<32x256xf32>
    %30 = arith.truncf %29 : vector<32x256xf32> to vector<32x256xbf16>
    %c32 = arith.constant 32 : index
    %c0_19 = arith.constant 0 : index
    %31 = vector.load %arg9[%c32, %c0_19] : memref<288x256xbf16, #tpu.memory_space<vmem>>, vector<32x256xbf16>
    tpu.vector_store %arg9[%c32, %c0_19], %30 {strides = array<i32>} : memref<288x256xbf16, #tpu.memory_space<vmem>>, vector<32x256xbf16>,
    %c15_i32 = arith.constant 15 : i32
    %32 = tpu.dynamic_rotate %17 by %c15_i32 dim 1 : vector<32x256xf32>, i32 -> vector<32x256xf32>
    %c2 = arith.constant 2 : index
    %c0_20 = arith.constant 0 : index
    %c0_21 = arith.constant 0 : index
    %33 = vector.load %arg7[%c2, %c0_20, %c0_21] : memref<9x1x256xf32, #tpu.memory_space<vmem>>, vector<1x1x256xf32>
    %34 = vector.shape_cast %33 : vector<1x1x256xf32> to vector<1x256xf32>
    %35 = vector.broadcast %34 : vector<1x256xf32> to vector<32x256xf32>
    %36 = arith.mulf %32, %35 : vector<32x256xf32>
    %37 = arith.truncf %36 : vector<32x256xf32> to vector<32x256xbf16>
    %c64 = arith.constant 64 : index
    %c0_22 = arith.constant 0 : index
    %38 = vector.load %arg9[%c64, %c0_22] : memref<288x256xbf16, #tpu.memory_space<vmem>>, vector<32x256xbf16>
    tpu.vector_store %arg9[%c64, %c0_22], %37 {strides = array<i32>} : memref<288x256xbf16, #tpu.memory_space<vmem>>, vector<32x256xbf16>,
    %c1_i32 = arith.constant 1 : i32
    %39 = tpu.dynamic_rotate %17 by %c1_i32 dim 1 : vector<32x256xf32>, i32 -> vector<32x256xf32>
    %c3 = arith.constant 3 : index
    %c0_23 = arith.constant 0 : index
    %c0_24 = arith.constant 0 : index
    %40 = vector.load %arg7[%c3, %c0_23, %c0_24] : memref<9x1x256xf32, #tpu.memory_space<vmem>>, vector<1x1x256xf32>
    %41 = vector.shape_cast %40 : vector<1x1x256xf32> to vector<1x256xf32>
    %42 = vector.broadcast %41 : vector<1x256xf32> to vector<32x256xf32>
    %43 = arith.mulf %39, %42 : vector<32x256xf32>
    %44 = arith.truncf %43 : vector<32x256xf32> to vector<32x256xbf16>
    %c96 = arith.constant 96 : index
    %c0_25 = arith.constant 0 : index
    %45 = vector.load %arg9[%c96, %c0_25] : memref<288x256xbf16, #tpu.memory_space<vmem>>, vector<32x256xbf16>
    tpu.vector_store %arg9[%c96, %c0_25], %44 {strides = array<i32>} : memref<288x256xbf16, #tpu.memory_space<vmem>>, vector<32x256xbf16>,
    %c4 = arith.constant 4 : index
    %c0_26 = arith.constant 0 : index
    %c0_27 = arith.constant 0 : index
    %46 = vector.load %arg7[%c4, %c0_26, %c0_27] : memref<9x1x256xf32, #tpu.memory_space<vmem>>, vector<1x1x256xf32>
    %47 = vector.shape_cast %46 : vector<1x1x256xf32> to vector<1x256xf32>
    %48 = vector.broadcast %47 : vector<1x256xf32> to vector<32x256xf32>
    %49 = arith.mulf %17, %48 : vector<32x256xf32>
    %50 = arith.truncf %49 : vector<32x256xf32> to vector<32x256xbf16>
    %c128 = arith.constant 128 : index
    %c0_28 = arith.constant 0 : index
    %51 = vector.load %arg9[%c128, %c0_28] : memref<288x256xbf16, #tpu.memory_space<vmem>>, vector<32x256xbf16>
    tpu.vector_store %arg9[%c128, %c0_28], %50 {strides = array<i32>} : memref<288x256xbf16, #tpu.memory_space<vmem>>, vector<32x256xbf16>,
    %c255_i32 = arith.constant 255 : i32
    %52 = tpu.dynamic_rotate %17 by %c255_i32 dim 1 : vector<32x256xf32>, i32 -> vector<32x256xf32>
    %c5 = arith.constant 5 : index
    %c0_29 = arith.constant 0 : index
    %c0_30 = arith.constant 0 : index
    %53 = vector.load %arg7[%c5, %c0_29, %c0_30] : memref<9x1x256xf32, #tpu.memory_space<vmem>>, vector<1x1x256xf32>
    %54 = vector.shape_cast %53 : vector<1x1x256xf32> to vector<1x256xf32>
    %55 = vector.broadcast %54 : vector<1x256xf32> to vector<32x256xf32>
    %56 = arith.mulf %52, %55 : vector<32x256xf32>
    %57 = arith.truncf %56 : vector<32x256xf32> to vector<32x256xbf16>
    %c160 = arith.constant 160 : index
    %c0_31 = arith.constant 0 : index
    %58 = vector.load %arg9[%c160, %c0_31] : memref<288x256xbf16, #tpu.memory_space<vmem>>, vector<32x256xbf16>
    tpu.vector_store %arg9[%c160, %c0_31], %57 {strides = array<i32>} : memref<288x256xbf16, #tpu.memory_space<vmem>>, vector<32x256xbf16>,
    %c241_i32 = arith.constant 241 : i32
    %59 = tpu.dynamic_rotate %17 by %c241_i32 dim 1 : vector<32x256xf32>, i32 -> vector<32x256xf32>
    %c6 = arith.constant 6 : index
    %c0_32 = arith.constant 0 : index
    %c0_33 = arith.constant 0 : index
    %60 = vector.load %arg7[%c6, %c0_32, %c0_33] : memref<9x1x256xf32, #tpu.memory_space<vmem>>, vector<1x1x256xf32>
    %61 = vector.shape_cast %60 : vector<1x1x256xf32> to vector<1x256xf32>
    %62 = vector.broadcast %61 : vector<1x256xf32> to vector<32x256xf32>
    %63 = arith.mulf %59, %62 : vector<32x256xf32>
    %64 = arith.truncf %63 : vector<32x256xf32> to vector<32x256xbf16>
    %c192 = arith.constant 192 : index
    %c0_34 = arith.constant 0 : index
    %65 = vector.load %arg9[%c192, %c0_34] : memref<288x256xbf16, #tpu.memory_space<vmem>>, vector<32x256xbf16>
    tpu.vector_store %arg9[%c192, %c0_34], %64 {strides = array<i32>} : memref<288x256xbf16, #tpu.memory_space<vmem>>, vector<32x256xbf16>,
    %c240_i32 = arith.constant 240 : i32
    %66 = tpu.dynamic_rotate %17 by %c240_i32 dim 1 : vector<32x256xf32>, i32 -> vector<32x256xf32>
    %c7 = arith.constant 7 : index
    %c0_35 = arith.constant 0 : index
    %c0_36 = arith.constant 0 : index
    %67 = vector.load %arg7[%c7, %c0_35, %c0_36] : memref<9x1x256xf32, #tpu.memory_space<vmem>>, vector<1x1x256xf32>
    %68 = vector.shape_cast %67 : vector<1x1x256xf32> to vector<1x256xf32>
    %69 = vector.broadcast %68 : vector<1x256xf32> to vector<32x256xf32>
    %70 = arith.mulf %66, %69 : vector<32x256xf32>
    %71 = arith.truncf %70 : vector<32x256xf32> to vector<32x256xbf16>
    %c224 = arith.constant 224 : index
    %c0_37 = arith.constant 0 : index
    %72 = vector.load %arg9[%c224, %c0_37] : memref<288x256xbf16, #tpu.memory_space<vmem>>, vector<32x256xbf16>
    tpu.vector_store %arg9[%c224, %c0_37], %71 {strides = array<i32>} : memref<288x256xbf16, #tpu.memory_space<vmem>>, vector<32x256xbf16>,
    %c239_i32 = arith.constant 239 : i32
    %73 = tpu.dynamic_rotate %17 by %c239_i32 dim 1 : vector<32x256xf32>, i32 -> vector<32x256xf32>
    %c8 = arith.constant 8 : index
    %c0_38 = arith.constant 0 : index
    %c0_39 = arith.constant 0 : index
    %74 = vector.load %arg7[%c8, %c0_38, %c0_39] : memref<9x1x256xf32, #tpu.memory_space<vmem>>, vector<1x1x256xf32>
    %75 = vector.shape_cast %74 : vector<1x1x256xf32> to vector<1x256xf32>
    %76 = vector.broadcast %75 : vector<1x256xf32> to vector<32x256xf32>
    %77 = arith.mulf %73, %76 : vector<32x256xf32>
    %78 = arith.truncf %77 : vector<32x256xf32> to vector<32x256xbf16>
    %c256 = arith.constant 256 : index
    %c0_40 = arith.constant 0 : index
    %79 = vector.load %arg9[%c256, %c0_40] : memref<288x256xbf16, #tpu.memory_space<vmem>>, vector<32x256xbf16>
    tpu.vector_store %arg9[%c256, %c0_40], %78 {strides = array<i32>} : memref<288x256xbf16, #tpu.memory_space<vmem>>, vector<32x256xbf16>,
    %c0_41 = arith.constant 0 : index
    %c0_42 = arith.constant 0 : index
    %80 = vector.load %arg6[%c0_41, %c0_42] : memref<8x288xbf16, #tpu.memory_space<vmem>>, vector<8x288xbf16>
    %c0_43 = arith.constant 0 : index
    %c0_44 = arith.constant 0 : index
    %81 = vector.load %arg9[%c0_43, %c0_44] : memref<288x256xbf16, #tpu.memory_space<vmem>>, vector<288x256xbf16>
    %cst_45 = arith.constant dense<0.000000e+00> : vector<8x256xf32>
    %82 = tpu.matmul %80, %81, %cst_45 {dimension_numbers = #tpu.dot_dimension_numbers<[1], [0], [0], [1], [0, 0, 1, 1], [], []>} : vector<8x288xbf16>, vector<288x256xbf16>, vector<8x256xf32> -> vector<8x256xf32>
    %c0_46 = arith.constant 0 : index
    %c0_47 = arith.constant 0 : index
    %c0_48 = arith.constant 0 : index
    %83 = vector.load %arg8[%c0_46, %c0_47, %c0_48] : memref<1x12x256xf32, #tpu.memory_space<vmem>>, vector<1x8x256xf32>
    %84 = vector.shape_cast %83 : vector<1x8x256xf32> to vector<8x256xf32>
    %85 = vector.shape_cast %82 : vector<8x256xf32> to vector<1x8x256xf32>
    tpu.vector_store %arg8[%c0_46, %c0_47, %c0_48], %85 {strides = array<i32>} : memref<1x12x256xf32, #tpu.memory_space<vmem>>, vector<1x8x256xf32>,
    %c0_49 = arith.constant 0 : index
    %c8_50 = arith.constant 8 : index
    %c0_51 = arith.constant 0 : index
    %86 = vector.load %arg8[%c0_49, %c8_50, %c0_51] : memref<1x12x256xf32, #tpu.memory_space<vmem>>, vector<1x4x256xf32>
    %87 = vector.shape_cast %86 : vector<1x4x256xf32> to vector<4x256xf32>
    %88 = vector.shape_cast %1 : vector<4x256xf32> to vector<1x4x256xf32>
    tpu.vector_store %arg8[%c0_49, %c8_50, %c0_51], %88 {strides = array<i32>} : memref<1x12x256xf32, #tpu.memory_space<vmem>>, vector<1x4x256xf32>,
    return
  }
  func.func @transform_0(%arg0: i32) -> (i32, i32, i32) {
    %c0_i32 = arith.constant 0 : i32
    %c0_i32_0 = arith.constant 0 : i32
    %c0_i32_1 = arith.constant 0 : i32
    return %arg0, %c0_i32, %c0_i32_0 : i32, i32, i32
  }
  func.func @transform_1(%arg0: i32) -> (i32, i32) {
    %c0_i32 = arith.constant 0 : i32
    %c0_i32_0 = arith.constant 0 : i32
    %c0_i32_1 = arith.constant 0 : i32
    return %c0_i32, %c0_i32_0 : i32, i32
  }
  func.func @transform_2(%arg0: i32) -> (i32, i32) {
    %c0_i32 = arith.constant 0 : i32
    %c0_i32_0 = arith.constant 0 : i32
    %c0_i32_1 = arith.constant 0 : i32
    return %c0_i32, %c0_i32_0 : i32, i32
  }
  func.func @transform_3(%arg0: i32) -> (i32, i32) {
    %c0_i32 = arith.constant 0 : i32
    %c0_i32_0 = arith.constant 0 : i32
    %c0_i32_1 = arith.constant 0 : i32
    return %c0_i32, %c0_i32_0 : i32, i32
  }
  func.func @transform_4(%arg0: i32) -> (i32, i32) {
    %c0_i32 = arith.constant 0 : i32
    %c0_i32_0 = arith.constant 0 : i32
    %c0_i32_1 = arith.constant 0 : i32
    return %c0_i32, %c0_i32_0 : i32, i32
  }
  func.func @transform_5(%arg0: i32) -> (i32, i32) {
    %c0_i32 = arith.constant 0 : i32
    %c0_i32_0 = arith.constant 0 : i32
    %c0_i32_1 = arith.constant 0 : i32
    return %c0_i32, %c0_i32_0 : i32, i32
  }
  func.func @transform_6(%arg0: i32) -> (i32, i32, i32) {
    %c0_i32 = arith.constant 0 : i32
    %c0_i32_0 = arith.constant 0 : i32
    %c0_i32_1 = arith.constant 0 : i32
    %c0_i32_2 = arith.constant 0 : i32
    return %c0_i32, %c0_i32_0, %c0_i32_1 : i32, i32, i32
  }
  func.func @transform_7(%arg0: i32) -> (i32, i32, i32) {
    %c0_i32 = arith.constant 0 : i32
    %c0_i32_0 = arith.constant 0 : i32
    %c0_i32_1 = arith.constant 0 : i32
    return %arg0, %c0_i32, %c0_i32_0 : i32, i32, i32
  }
}

</mosaic_0001>

<bundles_post_ra>
// kernel: tpu_custom_call.1
= control target key start
LH: loop header
LB: loop body
LE: loop exit
PB: predicated region body
PF: predicated region fallthrough
CT: control target
= control target key end

     0   :  { %s1704_s24 = smov 0   ;;  %s2316_s0 = inlined_call_operand.vmem [shape: f32[2,4,256], index: 0, kind: input, shape index: {}]   ;;  %s2317_s1 = inlined_call_operand.vmem [shape: f32[4,1], index: 1, kind: input, shape index: {}]   ;;  %s2318_s2 = inlined_call_operand.vmem [shape: f32[4,1], index: 2, kind: input, shape index: {}]   ;;  %s2319_s3 = inlined_call_operand.vmem [shape: bf16[32,4], index: 3, kind: input, shape index: {}]   ;;  %s2320_s4 = inlined_call_operand.vmem [shape: f32[32,1], index: 4, kind: input, shape index: {}]   ;;  %s2321_s5 = inlined_call_operand.vmem [shape: bf16[8,288], index: 5, kind: input, shape index: {}]   ;;  %s2322_s6 = inlined_call_operand.vmem [shape: f32[9,1,256], index: 6, kind: input, shape index: {}]   ;;  %s2323_s7 = inlined_call_operand.vmem [shape: f32[2,12,256], index: 7, kind: output, shape index: {}]  }
   0x1 LB: > { %s1446_s25 = sadd.s32 4294967295, %s1652_s24   ;;  %p1450_p0 = scmp.ge.s32.totalorder %s1652_s24, 1  ;;  %s1652_s24 = sphi %s1704_s24, %s17_s24  }
   0x2   : > { %p237_p1 = scmp.lt.s32.totalorder %s1652_s24, 3 }
   0x4   : > { %p238_p2 = pnand %p1450_p0, %p237_p1 }
   0x6   : > { %241 = sbr.rel (%p238_p2) target bundleno = 805 (0x325), region = 48 }
   0xb   : > { %v281_v0 = vld [vmem:[%s2317_s1] sm:$0xf]  ;;  %v1654_v1 = vmov 0   ;;  %v321_v4 = vld [vmem:[%s2320_s4 + $0x10] sm:$0xff]  ;;  %v322_v5 = vld [vmem:[%s2320_s4 + $0x18] sm:$0xff]  ;;  %p269_p3 = scmp.lt.s32.totalorder %s1446_s25, 1  ;;  %v289_v9 = vlaneseq }
   0xc   : > { %1638 = vset.pattern.permute.xlu0 %v1654_v1  ;;  %399 = vmatprep.mubr.bf16.mxu0 %v1654_v1  ;;  %v295_v2 = vld [vmem:[%s2318_s2] sm:$0xf]  ;;  %v320_v6 = vld [vmem:[%s2320_s4 + $0x8] sm:$0xff]  ;;  %v1655_v7 = vmov 839922192   ;;  %vm360_vm0 = vcmask 1041408  }
   0xd   : > { %284 = vperm.xlu0 %1638, %v281_v0   ;;  %1639 = vset.pattern.permute.xlu1 %v1654_v1  ;;  %v319_v3 = vld [vmem:[%s2320_s4] sm:$0xff]  ;;  %v287_v8 = vunpack.c.l.s4 %v1655_v7  ;;  %s2351_s25 = smov (!%p269_p3, %s1446_s25), 1  ;;  %v1733_v11 = vshrl.u32 %v289_v9, 7  ;;  %vm353_vm1 = vcmask 31744   ;;  %v1642_v26 = vld [vmem:[%s2319_s3 + $0x8] sm:$0xff]   ;;  %s1656_s23 = smov 1  }
   0xe   : > { %335 = vperm.xlu1 %1639, %v321_v4   ;;  %s1546_s15 = sshll.u32 %s2351_s25, 3  ;;  %v1641_v25 = vld [vmem:[%s2319_s3] sm:$0xff]   ;;  %s1657_s26 = smov 15   ;;  %v1878_v0 = vand.u32 127, %v289_v9  ;;  %vm1298_vm10 = vcmask 261120  }
   0xf   : > { %v288_v10 = vunpack.c.0.s8 %v287_v8  ;;  %s273_s18 = scalar_lea.vmem %s2316_s0, %s1546_s15  ;;  %s1658_s27 = smov 16   ;;  %v1869_v58 = vld [vmem:[%s2321_s5] sm:$0xff] }
  0x10   : > { %v1740_v15 = vld [vmem:[%s273_s18] sm:$0xff]  ;;  %s1659_s28 = smov 17   ;;  %s1660_s29 = smov 112   ;;  %2334 = vst [vmem:[#allocation7_spill] sm:$0xff] %v1869_v58  ;;  %v1505_v61 = vcombine.high %v1869_v58, %v1869_v58  ;;  %vm667_vm2 = vcmp.lt.s32.totalorder %v1878_v0, 1  ;;  %vm593_vm3 = vcmp.lt.s32.totalorder %v1878_v0, 15 }
  0x11   : > { %298 = vperm.xlu0 %1638, %v295_v2   ;;  %v291_v12 = vsub.s32 %v288_v10, %v1733_v11  ;;  %2330 = vst [vmem:[#allocation3_spill] sm:$0xff] %v1740_v15  ;;  %s1661_s30 = smov 113   ;;  %s1662_s8 = smov 127   ;;  %v1885_v2 = vsub.s32 0, %v1733_v11  ;;  %v1469_v8 = vld [vmem:[%s2322_s6 + $0x4] sm:$0x3] }
  0x12   : > { %340 = vperm.xlu1 %1639, %v322_v5   ;;  %s1663_s9 = smov 111   ;;  %1334 = vmatprep.mubr.bf16.mxu1 %v1505_v61  ;;  %vm519_vm4 = vcmp.lt.s32.totalorder %v1878_v0, 16  ;;  %vm446_vm5 = vcmp.lt.s32.totalorder %v1878_v0, 17  ;;  %vm938_vm6 = vcmp.lt.s32.totalorder %v1878_v0, 112  ;;  %vm864_vm7 = vcmp.lt.s32.totalorder %v1878_v0, 113  ;;  %s1547_s11 = sshll.u32 %s2351_s25, 5 }
  0x13   : > { %vm790_vm8 = vcmp.lt.s32.totalorder %v1878_v0, 127  ;;  %vm1012_vm9 = vcmp.lt.s32.totalorder %v1878_v0, 111  ;;  %s278_s14 = scalar_lea.vmem %s2323_s7, %s1547_s11 }
  0x15   : > { %325 = vperm.xlu0 %1638, %v319_v3   ;;  %v1888_v3 = vsub.s32 1, %v1733_v11 }
  0x16   : > { %330 = vperm.xlu1 %1639, %v320_v6  }
  0x88   : > { %v285_v13 = vpop.permute.xlu0 %284 }
  0x89   : > { %v292_v14 = vrot.slane %v285_v13, %v291_v12  ;;  %v336_v27 = vpop.permute.xlu1 %335  ;;  %v1464_v13 = vld [vmem:[%s2322_s6 + $0x2] sm:$0x3] }
  0x8b   : > { %v294_v17 = vmul.f32 %v292_v14, %v1740_v15 }
  0x8c   : > { %v299_v16 = vpop.permute.xlu0 %298 }
  0x8d   : > { %v306_v18 = vrot.slane %v299_v16, %v291_v12  ;;  %v341_v28 = vpop.permute.xlu1 %340 }
  0x8f   : > { %v308_v19 = vadd.f32 %v306_v18, %v294_v17  ;;  %v1921_v17 = vrot.slane %v1469_v8, %v1885_v2  ;;  %v1924_v18 = vrot.slane %v1469_v8, %v1888_v3 }
  0x90   : > { %v326_v29 = vpop.permute.xlu0 %325 }
  0x91   : > { %v309_v20 = vmax.f32 %v308_v19, 0.0  ;;  %v331_v34 = vpop.permute.xlu1 %330 }
  0x93   : > { %v315_v21 = vcombine.high %v309_v20, %v309_v20  ;;  %v317_v22 = vpack.c.bf16 %v309_v20, %v309_v20 }
  0x95   : > { %v318_v23 = vpack.c.bf16 %v315_v21, %v315_v21  ;;  %v362_v24 = vsel %vm360_vm0, %v317_v22, 0  ;;  %v1928_v21 = vrot.slane %v1464_v13, %v1885_v2  ;;  %v1931_v22 = vrot.slane %v1464_v13, %v1888_v3 }
  0x97   : > { %1457 = vmatprep.subr.msk.bf16.mxu0 %vm360_vm0, %v318_v23 }
  0x98   : > { %382 = vmatpush1.bf16.msra.mxu0 %v362_v24 }
  0x9b   : > { %1458 = vmatmul.mubr.msk.bf16.vlgmr.msra.gmra.mxu0 %vm353_vm1, %v1641_v25 }
  0x9c   : > { %409 = vmatprep.mubr.bf16.mxu0 %v1654_v1 }
  0xa3   : > { %1459 = vmatmul.mubr.msk.bf16.gmra.mxu0 %vm353_vm1, %v1642_v26 }
  0xa4   : > { %1375 = vmatprep.mubr.bf16.mxu0 %v1654_v1  ;;  %v1474_v1 = vld [vmem:[%s2322_s6 + $0x6] sm:$0x3] }
  0xa5   : > { %v1896_v6 = vrot.slane %v1474_v1, %v1885_v2  ;;  %v1899_v7 = vrot.slane %v1474_v1, %v1888_v3 }
 0x15b   : > { %v401_v30 = vpop.f32.mrf.mxu0 }
 0x15c   : > { %v402_v31 = vadd.f32 %v401_v30, %v326_v29 }
 0x15d   : > { %v403_v32 = vpop.f32.mrf.mxu0 }
 0x15e   : > { %v1749_v33 = vmax.f32 %v402_v31, 0.0  ;;  %v404_v38 = vadd.f32 %v403_v32, %v326_v29 }
 0x15f   : > { %v405_v35 = vpop.f32.mrf.mxu0 }
 0x160   : > { %2331 = vst [vmem:[#allocation4_spill] sm:$0xff] %v1749_v33  ;;  %v406_v36 = vadd.f32 %v405_v35, %v331_v34  ;;  %651 = vrot.lane.b32.xlu0 %v1749_v33, %s1656_s23  ;;  %v1771_v40 = vmax.f32 %v404_v38, 0.0 }
 0x161   : > { %v407_v39 = vpop.f32.mrf.mxu0 }
 0x162   : > { %v1753_v37 = vmax.f32 %v406_v36, 0.0  ;;  %2333 = vst [vmem:[#allocation6_spill] sm:$0xff] %v1771_v40  ;;  %v408_v41 = vadd.f32 %v407_v39, %v331_v34 }
 0x163   : > { %v411_v43 = vpop.f32.mrf.mxu0 }
 0x164   : > { %2332 = vst [vmem:[#allocation5_spill] sm:$0xff] %v1753_v37  ;;  %653 = vrot.lane.b32.xlu1 %v1753_v37, %s1656_s23  ;;  %577 = vrot.lane.b32.xlu0 %v1749_v33, %s1657_s26  ;;  %v1777_v42 = vmax.f32 %v408_v41, 0.0  ;;  %v412_v45 = vadd.f32 %v411_v43, %v336_v27 }
 0x165   : > { %v413_v44 = vpop.f32.mrf.mxu0 }
 0x166   : > { %v1795_v47 = vmax.f32 %v412_v45, 0.0  ;;  %v414_v50 = vadd.f32 %v413_v44, %v336_v27  ;;  %v455_v27 = vld [vmem:[%s2322_s6] sm:$0x3] }
 0x167   : > { %v415_v46 = vpop.f32.mrf.mxu0  ;;  %v1958_v35 = vrot.slane %v455_v27, %v1885_v2  ;;  %v1961_v36 = vrot.slane %v455_v27, %v1888_v3 }
 0x168   : > { %579 = vrot.lane.b32.xlu1 %v1753_v37, %s1657_s26  ;;  %503 = vrot.lane.b32.xlu0 %v1749_v33, %s1658_s27  ;;  %v416_v48 = vadd.f32 %v415_v46, %v341_v28  ;;  %v1822_v52 = vmax.f32 %v414_v50, 0.0  ;;  %v1494_v46 = vld [vmem:[%s2322_s6 + $0xe] sm:$0x3] }
 0x169   : > { %v417_v51 = vpop.f32.mrf.mxu0 }
 0x16a   : > { %v1801_v49 = vmax.f32 %v416_v48, 0.0  ;;  %v418_v53 = vadd.f32 %v417_v51, %v341_v28 }
 0x16c   : > { %505 = vrot.lane.b32.xlu1 %v1753_v37, %s1658_s27  ;;  %428 = vrot.lane.b32.xlu0 %v1749_v33, %s1659_s28  ;;  %v1827_v54 = vmax.f32 %v418_v53, 0.0 }
 0x170   : > { %430 = vrot.lane.b32.xlu1 %v1753_v37, %s1659_s28  ;;  %922 = vrot.lane.b32.xlu0 %v1749_v33, %s1660_s29 }
 0x174   : > { %924 = vrot.lane.b32.xlu1 %v1753_v37, %s1660_s29  ;;  %659 = vrot.lane.b32.xlu0 %v1771_v40, %s1656_s23 }
 0x178   : > { %661 = vrot.lane.b32.xlu1 %v1777_v42, %s1656_s23  ;;  %585 = vrot.lane.b32.xlu0 %v1771_v40, %s1657_s26 }
 0x17c   : > { %587 = vrot.lane.b32.xlu1 %v1777_v42, %s1657_s26  ;;  %511 = vrot.lane.b32.xlu0 %v1771_v40, %s1658_s27 }
 0x180   : > { %513 = vrot.lane.b32.xlu1 %v1777_v42, %s1658_s27  ;;  %436 = vrot.lane.b32.xlu0 %v1771_v40, %s1659_s28 }
 0x184   : > { %438 = vrot.lane.b32.xlu1 %v1777_v42, %s1659_s28  ;;  %930 = vrot.lane.b32.xlu0 %v1771_v40, %s1660_s29 }
 0x188   : > { %932 = vrot.lane.b32.xlu1 %v1777_v42, %s1660_s29  ;;  %655 = vrot.lane.b32.xlu0 %v1795_v47, %s1656_s23 }
 0x18c   : > { %657 = vrot.lane.b32.xlu1 %v1801_v49, %s1656_s23  ;;  %581 = vrot.lane.b32.xlu0 %v1795_v47, %s1657_s26 }
 0x190   : > { %583 = vrot.lane.b32.xlu1 %v1801_v49, %s1657_s26  ;;  %507 = vrot.lane.b32.xlu0 %v1795_v47, %s1658_s27 }
 0x194   : > { %509 = vrot.lane.b32.xlu1 %v1801_v49, %s1658_s27  ;;  %432 = vrot.lane.b32.xlu0 %v1795_v47, %s1659_s28 }
 0x198   : > { %434 = vrot.lane.b32.xlu1 %v1801_v49, %s1659_s28  ;;  %926 = vrot.lane.b32.xlu0 %v1795_v47, %s1660_s29 }
 0x19c   : > { %928 = vrot.lane.b32.xlu1 %v1801_v49, %s1660_s29  ;;  %852 = vrot.lane.b32.xlu0 %v1795_v47, %s1661_s30 }
 0x1a0   : > { %854 = vrot.lane.b32.xlu1 %v1801_v49, %s1661_s30  ;;  %663 = vrot.lane.b32.xlu0 %v1822_v52, %s1656_s23 }
 0x1a4   : > { %665 = vrot.lane.b32.xlu1 %v1827_v54, %s1656_s23  ;;  %848 = vrot.lane.b32.xlu0 %v1749_v33, %s1661_s30 }
 0x1a8   : > { %850 = vrot.lane.b32.xlu1 %v1753_v37, %s1661_s30  ;;  %589 = vrot.lane.b32.xlu0 %v1822_v52, %s1657_s26 }
 0x1ac   : > { %591 = vrot.lane.b32.xlu1 %v1827_v54, %s1657_s26  ;;  %515 = vrot.lane.b32.xlu0 %v1822_v52, %s1658_s27 }
 0x1b0   : > { %858 = vrot.lane.b32.xlu1 %v1777_v42, %s1661_s30  ;;  %440 = vrot.lane.b32.xlu0 %v1822_v52, %s1659_s28 }
 0x1b4   : > { %517 = vrot.lane.b32.xlu1 %v1827_v54, %s1658_s27  ;;  %934 = vrot.lane.b32.xlu0 %v1822_v52, %s1660_s29 }
 0x1b8   : > { %780 = vrot.lane.b32.xlu1 %v1801_v49, %s1662_s8  ;;  %860 = vrot.lane.b32.xlu0 %v1822_v52, %s1661_s30 }
 0x1bc   : > { %442 = vrot.lane.b32.xlu1 %v1827_v54, %s1659_s28  ;;  %856 = vrot.lane.b32.xlu0 %v1771_v40, %s1661_s30 }
 0x1c0   : > { %776 = vrot.lane.b32.xlu1 %v1753_v37, %s1662_s8  ;;  %778 = vrot.lane.b32.xlu0 %v1795_v47, %s1662_s8 }
 0x1c4   : > { %936 = vrot.lane.b32.xlu1 %v1827_v54, %s1660_s29  ;;  %786 = vrot.lane.b32.xlu0 %v1822_v52, %s1662_s8 }
 0x1c8   : > { %784 = vrot.lane.b32.xlu1 %v1777_v42, %s1662_s8  ;;  %774 = vrot.lane.b32.xlu0 %v1749_v33, %s1662_s8 }
 0x1cc   : > { %862 = vrot.lane.b32.xlu1 %v1827_v54, %s1661_s30  ;;  %782 = vrot.lane.b32.xlu0 %v1771_v40, %s1662_s8 }
 0x1d0   : > { %1002 = vrot.lane.b32.xlu1 %v1801_v49, %s1663_s9  ;;  %1000 = vrot.lane.b32.xlu0 %v1795_v47, %s1663_s9 }
 0x1d2   : > { %v652_v55 = vpop.permute.xlu0 %651 }
 0x1d4   : > { %788 = vrot.lane.b32.xlu1 %v1827_v54, %s1662_s8  ;;  %1008 = vrot.lane.b32.xlu0 %v1822_v52, %s1663_s9 }
 0x1d6   : > { %v654_v56 = vpop.permute.xlu1 %653  ;;  %v578_v57 = vpop.permute.xlu0 %577 }
 0x1d8   : > { %998 = vrot.lane.b32.xlu1 %v1753_v37, %s1663_s9  ;;  %996 = vrot.lane.b32.xlu0 %v1749_v33, %s1663_s9 }
 0x1da   : > { %v580_v59 = vpop.permute.xlu1 %579  ;;  %v504_v60 = vpop.permute.xlu0 %503 }
 0x1dc   : > { %1010 = vrot.lane.b32.xlu1 %v1827_v54, %s1663_s9  ;;  %1004 = vrot.lane.b32.xlu0 %v1771_v40, %s1663_s9  ;;  %v1489_v40 = vld [vmem:[%s2322_s6 + $0xc] sm:$0x3] }
 0x1de   : > { %v506_v62 = vpop.permute.xlu1 %505  ;;  %v1875_v63 = vpop.permute.xlu0 %428 }
 0x1e0   : > { %1006 = vrot.lane.b32.xlu1 %v1777_v42, %s1663_s9 }
 0x1e2   : > { %v1890_v4 = vpop.permute.xlu1 %430  ;;  %v1892_v5 = vpop.permute.xlu0 %922 }
 0x1e6   : > { %v1904_v9 = vpop.permute.xlu1 %924  ;;  %v660_v10 = vpop.permute.xlu0 %659 }
 0x1e7   : > { %v668_v11 = vsel %vm667_vm2, %v652_v55, %v660_v10  ;;  %v672_v12 = vsel %vm667_vm2, %v660_v10, %v652_v55 }
 0x1e8   : > { %v1915_v14 = vmul.f32 %v1896_v6, %v672_v12  ;;  %v1918_v16 = vmul.f32 %v1899_v7, %v668_v11 }
 0x1ea   : > { %v662_v19 = vpop.permute.xlu1 %661  ;;  %v586_v20 = vpop.permute.xlu0 %585 }
 0x1eb   : > { %v669_v23 = vsel %vm667_vm2, %v654_v56, %v662_v19  ;;  %v673_v24 = vsel %vm667_vm2, %v662_v19, %v654_v56  ;;  %v594_v25 = vsel %vm593_vm3, %v578_v57, %v586_v20  ;;  %v598_v26 = vsel %vm593_vm3, %v586_v20, %v578_v57 }
 0x1ec   : > { %v1945_v28 = vmul.f32 %v1896_v6, %v673_v24  ;;  %v1948_v29 = vmul.f32 %v1899_v7, %v669_v23  ;;  %v1951_v30 = vmul.f32 %v1921_v17, %v598_v26  ;;  %v1954_v31 = vmul.f32 %v1924_v18, %v594_v25 }
 0x1ed   : > { %v1992_v57 = vrot.slane %v1494_v46, %v1885_v2 }
 0x1ee   : > { %v588_v32 = vpop.permute.xlu1 %587  ;;  %v512_v34 = vpop.permute.xlu0 %511 }
 0x1ef   : > { %v595_v41 = vsel %vm593_vm3, %v580_v59, %v588_v32  ;;  %v599_v43 = vsel %vm593_vm3, %v588_v32, %v580_v59  ;;  %v520_v44 = vsel %vm519_vm4, %v504_v60, %v512_v34  ;;  %v524_v45 = vsel %vm519_vm4, %v512_v34, %v504_v60 }
 0x1f0   : > { %v1979_v48 = vmul.f32 %v1921_v17, %v599_v43  ;;  %v1982_v50 = vmul.f32 %v1924_v18, %v595_v41  ;;  %v1985_v51 = vmul.f32 %v1928_v21, %v524_v45  ;;  %v1988_v53 = vmul.f32 %v1931_v22, %v520_v44 }
 0x1f1   : > { %v1995_v59 = vrot.slane %v1494_v46, %v1888_v3 }
 0x1f2   : > { %v514_v55 = vpop.permute.xlu1 %513  ;;  %v437_v56 = vpop.permute.xlu0 %436 }
 0x1f3   : > { %v521_v1 = vsel %vm519_vm4, %v506_v62, %v514_v55  ;;  %v525_v8 = vsel %vm519_vm4, %v514_v55, %v506_v62  ;;  %v447_v10 = vsel %vm446_vm5, %v1875_v63, %v437_v56  ;;  %v451_v11 = vsel %vm446_vm5, %v437_v56, %v1875_v63 }
 0x1f4   : > { %v2012_v12 = vmul.f32 %v1928_v21, %v525_v8  ;;  %v2015_v13 = vmul.f32 %v1931_v22, %v521_v1  ;;  %v2018_v19 = vmul.f32 %v1958_v35, %v451_v11  ;;  %v2021_v20 = vmul.f32 %v1961_v36, %v447_v10 }
 0x1f6   : > { %v439_v62 = vpop.permute.xlu1 %438  ;;  %v931_v23 = vpop.permute.xlu0 %930 }
 0x1f7   : > { %v448_v25 = vsel %vm446_vm5, %v1890_v4, %v439_v62  ;;  %v452_v26 = vsel %vm446_vm5, %v439_v62, %v1890_v4  ;;  %v939_v27 = vsel %vm938_vm6, %v1892_v5, %v931_v23  ;;  %v943_v32 = vsel %vm938_vm6, %v931_v23, %v1892_v5 }
 0x1f8   : > { %v2040_v34 = vmul.f32 %v1958_v35, %v452_v26  ;;  %v2043_v41 = vmul.f32 %v1961_v36, %v448_v25  ;;  %v2046_v43 = vmul.f32 %v1992_v57, %v939_v27  ;;  %v2049_v44 = vmul.f32 %v1995_v59, %v943_v32 }
 0x1fa   : > { %v933_v4 = vpop.permute.xlu1 %932  ;;  %v656_v45 = vpop.permute.xlu0 %655 }
 0x1fb   : > { %v940_v55 = vsel %vm938_vm6, %v1904_v9, %v933_v4  ;;  %v944_v56 = vsel %vm938_vm6, %v933_v4, %v1904_v9 }
 0x1fc   : > { %v2062_v1 = vmul.f32 %v1992_v57, %v940_v55  ;;  %v2065_v8 = vmul.f32 %v1995_v59, %v944_v56 }
 0x1fe   : > { %v658_v10 = vpop.permute.xlu1 %657  ;;  %v582_v11 = vpop.permute.xlu0 %581 }
 0x202   : > { %v584_v25 = vpop.permute.xlu1 %583  ;;  %v508_v26 = vpop.permute.xlu0 %507 }
 0x206   : > { %v2071_v27 = vpop.permute.xlu1 %509  ;;  %v433_v32 = vpop.permute.xlu0 %432 }
 0x20a   : > { %v2073_v9 = vpop.permute.xlu1 %434  ;;  %v927_v4 = vpop.permute.xlu0 %926 }
 0x20e   : > { %v2075_v55 = vpop.permute.xlu1 %928  ;;  %v2077_v56 = vpop.permute.xlu0 %852 }
 0x212   : > { %v2079_v5 = vpop.permute.xlu1 %854  ;;  %v664_v46 = vpop.permute.xlu0 %663 }
 0x213   : > { %v670_v62 = vsel %vm667_vm2, %v656_v45, %v664_v46  ;;  %v674_v23 = vsel %vm667_vm2, %v664_v46, %v656_v45 }
 0x214   : > { %v693_v63 = vmul.f32 %v1896_v6, %v674_v23  ;;  %v694_v24 = vmul.f32 %v1899_v7, %v670_v62 }
 0x216   : > { %v666_v61 = vpop.permute.xlu1 %665  ;;  %v2087_v60 = vpop.permute.xlu0 %848 }
 0x217   : > { %v671_v39 = vsel %vm667_vm2, %v658_v10, %v666_v61  ;;  %v675_v38 = vsel %vm667_vm2, %v666_v61, %v658_v10 }
 0x218   : > { %v695_v15 = vmul.f32 %v1896_v6, %v675_v38  ;;  %v696_v58 = vmul.f32 %v1899_v7, %v671_v39  ;;  %v2112_v38 = vrot.slane %v1489_v40, %v1888_v3 }
 0x21a   : > { %v851_v33 = vpop.permute.xlu1 %850  ;;  %v590_v37 = vpop.permute.xlu0 %589  ;;  %v1599_v45 = vpack.c.bf16 %v696_v58, %v694_v24  ;;  %v1598_v46 = vpack.c.bf16 %v695_v15, %v693_v63  ;;  %v2335_v15 = vpack.c.bf16 %v1948_v29, %v1918_v16 }
 0x21b   : > { %v596_v62 = vsel %vm593_vm3, %v582_v11, %v590_v37  ;;  %v600_v23 = vsel %vm593_vm3, %v590_v37, %v582_v11  ;;  %v2109_v37 = vrot.slane %v1489_v40, %v1885_v2 }
 0x21c   : > { %v619_v61 = vmul.f32 %v1921_v17, %v600_v23  ;;  %v620_v6 = vmul.f32 %v1924_v18, %v596_v62  ;;  %1302 = vmatprep.subr.bf16.mxu1 %v1599_v45  ;;  %v2336_v45 = vpack.c.bf16 %v1945_v28, %v1915_v14 }
 0x21d   : > { %1303 = vmatpush1.bf16.msra.mxu1 %v1598_v46 }
 0x21e   : > { %v592_v7 = vpop.permute.xlu1 %591  ;;  %1304 = vmatprep.subr.bf16.mxu1 %v2335_v15  ;;  %v516_v58 = vpop.permute.xlu0 %515 }
 0x21f   : > { %v597_v39 = vsel %vm593_vm3, %v584_v25, %v592_v7  ;;  %v601_v24 = vsel %vm593_vm3, %v592_v7, %v584_v25  ;;  %v522_v63 = vsel %vm519_vm4, %v508_v26, %v516_v58  ;;  %v526_v16 = vsel %vm519_vm4, %v516_v58, %v508_v26 }
 0x220   : > { %v621_v29 = vmul.f32 %v1921_v17, %v601_v24  ;;  %v622_v10 = vmul.f32 %v1924_v18, %v597_v39  ;;  %v545_v11 = vmul.f32 %v1928_v21, %v526_v16  ;;  %v546_v40 = vmul.f32 %v1931_v22, %v522_v63 }
 0x221   : > { %1305 = vmatpush1.bf16.msra.mxu1 %v2336_v45 }
 0x222   : > { %v859_v46 = vpop.permute.xlu1 %858  ;;  %v441_v25 = vpop.permute.xlu0 %440  ;;  %v1595_v62 = vpack.c.bf16 %v622_v10, %v620_v6  ;;  %v1594_v23 = vpack.c.bf16 %v621_v29, %v619_v61  ;;  %v2338_v10 = vpack.c.bf16 %v1979_v48, %v1951_v30  ;;  %v2339_v48 = vpack.c.bf16 %v2015_v13, %v1988_v53 }
 0x223   : > { %v866_v7 = vsel %vm864_vm7, %v851_v33, %v859_v46  ;;  %v870_v17 = vsel %vm864_vm7, %v859_v46, %v851_v33  ;;  %v449_v18 = vsel %vm446_vm5, %v433_v32, %v441_v25  ;;  %v453_v26 = vsel %vm446_vm5, %v441_v25, %v433_v32 }
 0x224   : > { %v2138_v15 = vmul.f32 %v2109_v37, %v866_v7  ;;  %v2141_v14 = vmul.f32 %v2112_v38, %v870_v17  ;;  %v471_v28 = vmul.f32 %v1958_v35, %v453_v26  ;;  %v472_v61 = vmul.f32 %v1961_v36, %v449_v18  ;;  %1306 = vmatprep.subr.bf16.mxu1 %v1595_v62  ;;  %v1484_v26 = vld [vmem:[%s2322_s6 + $0xa] sm:$0x3] }
 0x225   : > { %1307 = vmatpush1.bf16.msra.mxu1 %v1594_v23  ;;  %v2337_v33 = vpack.c.bf16 %v1982_v50, %v1954_v31 }
 0x226   : > { %v518_v6 = vpop.permute.xlu1 %517  ;;  %v935_v58 = vpop.permute.xlu0 %934 }
 0x227   : > { %1308 = vmatprep.subr.bf16.mxu1 %v2337_v33  ;;  %v523_v32 = vsel %vm519_vm4, %v2071_v27, %v518_v6  ;;  %v527_v39 = vsel %vm519_vm4, %v518_v6, %v2071_v27  ;;  %v941_v24 = vsel %vm938_vm6, %v927_v4, %v935_v58  ;;  %v945_v63 = vsel %vm938_vm6, %v935_v58, %v927_v4 }
 0x228   : > { %v547_v16 = vmul.f32 %v1928_v21, %v527_v39  ;;  %v548_v31 = vmul.f32 %v1931_v22, %v523_v32  ;;  %v964_v50 = vmul.f32 %v1992_v57, %v941_v24  ;;  %v965_v29 = vmul.f32 %v1995_v59, %v945_v63 }
 0x229   : > { %1309 = vmatpush1.bf16.msra.mxu1 %v2338_v10  ;;  %v805_v32 = vrot.slane %v1484_v26, %v1885_v2  ;;  %v2341_v39 = vpack.c.bf16 %v2043_v41, %v2021_v20  ;;  %v2342_v10 = vpack.c.bf16 %v2040_v34, %v2018_v19  ;;  %v2343_v19 = vpack.c.bf16 %v2065_v8, %v2049_v44 }
 0x22a   : > { %v2165_v45 = vpop.permute.xlu1 %780  ;;  %v861_v27 = vpop.permute.xlu0 %860  ;;  %v1591_v46 = vpack.c.bf16 %v548_v31, %v546_v40  ;;  %v1590_v25 = vpack.c.bf16 %v547_v16, %v545_v11 }
 0x22b   : > { %v867_v4 = vsel %vm864_vm7, %v2077_v56, %v861_v27  ;;  %v871_v21 = vsel %vm864_vm7, %v861_v27, %v2077_v56 }
 0x22c   : > { %v2174_v22 = vmul.f32 %v2109_v37, %v867_v4  ;;  %v2177_v62 = vmul.f32 %v2112_v38, %v871_v21  ;;  %1310 = vmatprep.subr.bf16.mxu1 %v1591_v46 }
 0x22d   : > { %1311 = vmatpush1.bf16.msra.mxu1 %v1590_v25 }
 0x22e   : > { %v443_v30 = vpop.permute.xlu1 %442  ;;  %1312 = vmatprep.subr.bf16.mxu1 %v2339_v48  ;;  %v857_v11 = vpop.permute.xlu0 %856 }
 0x22f   : > { %v450_v40 = vsel %vm446_vm5, %v2073_v9, %v443_v30  ;;  %v454_v56 = vsel %vm446_vm5, %v443_v30, %v2073_v9  ;;  %v865_v23 = vsel %vm864_vm7, %v2087_v60, %v857_v11  ;;  %v869_v7 = vsel %vm864_vm7, %v857_v11, %v2087_v60 }
 0x230   : > { %v473_v53 = vmul.f32 %v1958_v35, %v454_v56  ;;  %v474_v13 = vmul.f32 %v1961_v36, %v450_v40  ;;  %v2197_v17 = vmul.f32 %v2109_v37, %v865_v23  ;;  %v887_v18 = vmul.f32 %v2112_v38, %v869_v7 }
 0x231   : > { %v2340_v9 = vpack.c.bf16 %v2012_v12, %v1985_v51  ;;  %v809_v51 = vrot.slane %v1484_v26, %v1888_v3  ;;  %v2344_v23 = vpack.c.bf16 %v2062_v1, %v2046_v43  ;;  %v1479_v1 = vld [vmem:[%s2322_s6 + $0x8] sm:$0x3] }
 0x232   : > { %v777_v6 = vpop.permute.xlu1 %776  ;;  %v779_v33 = vpop.permute.xlu0 %778  ;;  %v1587_v60 = vpack.c.bf16 %v474_v13, %v472_v61  ;;  %v1586_v58 = vpack.c.bf16 %v473_v53, %v471_v28  ;;  %v1609_v35 = vpack.c.bf16 %v2141_v14, %v887_v18  ;;  %v1608_v36 = vpack.c.bf16 %v2138_v15, %v2197_v17 }
 0x233   : > { %1313 = vmatpush1.bf16.msra.mxu1 %v2340_v9 }
 0x234   : > { %1314 = vmatprep.subr.bf16.mxu1 %v1587_v60 }
 0x236   : > { %v937_v12 = vpop.permute.xlu1 %936  ;;  %v787_v61 = vpop.permute.xlu0 %786 }
 0x237   : > { %1315 = vmatpush1.bf16.msra.mxu1 %v1586_v58  ;;  %v942_v14 = vsel %vm938_vm6, %v2075_v55, %v937_v12  ;;  %v946_v28 = vsel %vm938_vm6, %v937_v12, %v2075_v55  ;;  %v793_v24 = vsel %vm790_vm8, %v779_v33, %v787_v61  ;;  %v797_v63 = vsel %vm790_vm8, %v787_v61, %v779_v33 }
 0x238   : > { %1316 = vmatprep.subr.bf16.mxu1 %v2341_v39  ;;  %v966_v16 = vmul.f32 %v1992_v57, %v942_v14  ;;  %v967_v20 = vmul.f32 %v1995_v59, %v946_v28  ;;  %v816_v41 = vmul.f32 %v805_v32, %v793_v24  ;;  %v817_v31 = vmul.f32 %v809_v51, %v797_v63 }
 0x23a   : > { %v785_v27 = vpop.permute.xlu1 %784  ;;  %v775_v46 = vpop.permute.xlu0 %774  ;;  %v1615_v25 = vpack.c.bf16 %v967_v20, %v965_v29  ;;  %v1614_v55 = vpack.c.bf16 %v966_v16, %v964_v50  ;;  %v731_v16 = vrot.slane %v1479_v1, %v1885_v2 }
 0x23b   : > { %1317 = vmatpush1.bf16.msra.mxu1 %v2342_v10  ;;  %v792_v4 = vsel %vm790_vm8, %v777_v6, %v785_v27  ;;  %v796_v21 = vsel %vm790_vm8, %v785_v27, %v777_v6 }
 0x23c   : > { %v2234_v30 = vmul.f32 %v805_v32, %v792_v4  ;;  %v815_v57 = vmul.f32 %v809_v51, %v796_v21  ;;  %1318 = vmatprep.subr.bf16.mxu1 %v1615_v25  ;;  %v744_v10 = vmul.f32 %v731_v16, %v1801_v49  ;;  %v742_v49 = vmul.f32 %v731_v16, %v1795_v47  ;;  %v2347_v47 = vld [vmem:[#allocation4_spill] sm:$0xff] }
 0x23e   : > { %v863_v59 = vpop.permute.xlu1 %862  ;;  %v783_v34 = vpop.permute.xlu0 %782 }
 0x23f   : > { %1319 = vmatpush2.bf16.msra.mxu1 %v1614_v55  ;;  %v868_v50 = vsel %vm864_vm7, %v2079_v5, %v863_v59  ;;  %v872_v29 = vsel %vm864_vm7, %v863_v59, %v2079_v5  ;;  %v791_v48 = vsel %vm790_vm8, %v775_v46, %v783_v34  ;;  %v795_v11 = vsel %vm790_vm8, %v783_v34, %v775_v46  ;;  %v1499_v5 = vld [vmem:[%s2322_s6 + $0x10] sm:$0x3]  ;;  %v2345_v55 = vld [vmem:[#allocation6_spill] sm:$0xff] }
 0x240   : > { %1320 = vmatprep.subr.bf16.mxu1 %v2343_v19  ;;  %v892_v40 = vmul.f32 %v2109_v37, %v868_v50  ;;  %v893_v44 = vmul.f32 %v2112_v38, %v872_v29  ;;  %v812_v8 = vmul.f32 %v805_v32, %v791_v48  ;;  %v813_v56 = vmul.f32 %v809_v51, %v795_v11  ;;  %v2346_v59 = vld [vmem:[#allocation5_spill] sm:$0xff] }
 0x241   : > { %v1027_v38 = vrot.slane %v1499_v5, %v1885_v2  ;;  %v1031_v43 = vrot.slane %v1499_v5, %v1888_v3  ;;  %v740_v19 = vmul.f32 %v731_v16, %v2346_v59  ;;  %v738_v48 = vmul.f32 %v731_v16, %v2347_v47 }
 0x242   : > { %v1003_v7 = vpop.permute.xlu1 %1002  ;;  %v1001_v53 = vpop.permute.xlu0 %1000  ;;  %v1611_v13 = vpack.c.bf16 %v893_v44, %v2177_v62  ;;  %v1610_v18 = vpack.c.bf16 %v892_v40, %v2174_v22  ;;  %v1605_v9 = vpack.c.bf16 %v815_v57, %v813_v56  ;;  %v1604_v37 = vpack.c.bf16 %v2234_v30, %v812_v8  ;;  %v2348_v8 = vld [vmem:[#allocation7_spill] sm:$0xff]  ;;  %v1645_v56 = vld [vmem:[%s2321_s5 + $0x8] ss:$0 sps:$4 sm:$0xff]  }
 0x243   : > { %1321 = vmatpush2.bf16.msra.mxu1 %v2344_v23  ;;  %v735_v22 = vrot.slane %v1479_v1, %v1888_v3  ;;  %v1602_v57 = vpack.c.bf16 %v744_v10, %v742_v49  ;;  %v1600_v44 = vpack.c.bf16 %v740_v19, %v738_v48  ;;  %v1504_v0 = vcombine.low %v2348_v8, %v2348_v8  ;;  %v2349_v23 = vld [vmem:[#allocation3_spill] sm:$0xff] }
 0x244   : > { %1322 = vmatprep.subr.bf16.mxu1 %v1611_v13  ;;  %v1387_v5 = vcombine.high %v2349_v23, %v2349_v23  ;;  %1389 = vst [vmem:[%s278_s14 + $0x10] sm:$0xf] %v2349_v23 }
 0x245   : > { %v743_v63 = vmul.f32 %v735_v22, %v1822_v52  ;;  %v741_v15 = vmul.f32 %v735_v22, %v1777_v42  ;;  %v739_v4 = vmul.f32 %v735_v22, %v2345_v55 }
 0x246   : > { %v789_v26 = vpop.permute.xlu1 %788  ;;  %v1009_v62 = vpop.permute.xlu0 %1008  ;;  %1390 = vst [vmem:[%s278_s14 + $0x18] sm:$0xf] %v1387_v5 }
 0x247   : > { %1323 = vmatpush2.bf16.msra.mxu1 %v1610_v18  ;;  %v794_v6 = vsel %vm790_vm8, %v2165_v45, %v789_v26  ;;  %v798_v33 = vsel %vm790_vm8, %v789_v26, %v2165_v45  ;;  %v1015_v60 = vsel %vm1012_vm9, %v1001_v53, %v1009_v62  ;;  %v1019_v58 = vsel %vm1012_vm9, %v1009_v62, %v1001_v53 }
 0x248   : > { %1324 = vmatprep.subr.bf16.mxu1 %v1609_v35  ;;  %v818_v12 = vmul.f32 %v805_v32, %v794_v6  ;;  %v819_v39 = vmul.f32 %v809_v51, %v798_v33  ;;  %v1038_v35 = vmul.f32 %v1027_v38, %v1015_v60  ;;  %v1039_v61 = vmul.f32 %v1031_v43, %v1019_v58 }
 0x249   : > { %v745_v45 = vmul.f32 %v735_v22, %v1827_v54  ;;  %v1601_v29 = vpack.c.bf16 %v741_v15, %v739_v4 }
 0x24a   : > { %v999_v3 = vpop.permute.xlu1 %998  ;;  %v997_v14 = vpop.permute.xlu0 %996  ;;  %v1607_v28 = vpack.c.bf16 %v819_v39, %v817_v31  ;;  %v1606_v24 = vpack.c.bf16 %v818_v12, %v816_v41 }
 0x24b   : > { %1325 = vmatpush2.bf16.msra.mxu1 %v1608_v36  ;;  %v1603_v20 = vpack.c.bf16 %v745_v45, %v743_v63 }
 0x24c   : > { %1326 = vmatprep.subr.bf16.mxu1 %v1607_v28 }
 0x24e   : > { %v1011_v32 = vpop.permute.xlu1 %1010  ;;  %v1005_v51 = vpop.permute.xlu0 %1004 }
 0x24f   : > { %1327 = vmatpush2.bf16.msra.mxu1 %v1606_v24  ;;  %v1016_v17 = vsel %vm1012_vm9, %v1003_v7, %v1011_v32  ;;  %v1020_v54 = vsel %vm1012_vm9, %v1011_v32, %v1003_v7  ;;  %v1013_v52 = vsel %vm1012_vm9, %v997_v14, %v1005_v51  ;;  %v1017_v2 = vsel %vm1012_vm9, %v1005_v51, %v997_v14 }
 0x250   : > { %1328 = vmatprep.subr.bf16.mxu1 %v1605_v9  ;;  %v1040_v36 = vmul.f32 %v1027_v38, %v1016_v17  ;;  %v1041_v41 = vmul.f32 %v1031_v43, %v1020_v54  ;;  %v1034_v31 = vmul.f32 %v1027_v38, %v1013_v52  ;;  %v1035_v27 = vmul.f32 %v1031_v43, %v1017_v2 }
 0x252   : > { %v1618_v42 = vpack.c.bf16 %v1040_v36, %v1038_v35  ;;  %v1007_v46 = vpop.permute.xlu1 %1006  ;;  %v1619_v25 = vpack.c.bf16 %v1041_v41, %v1039_v61 }
 0x253   : > { %1329 = vmatpush2.bf16.msra.mxu1 %v1604_v37  ;;  %v1014_v21 = vsel %vm1012_vm9, %v999_v3, %v1007_v46  ;;  %v1018_v30 = vsel %vm1012_vm9, %v1007_v46, %v999_v3 }
 0x254   : > { %1330 = vmatprep.subr.bf16.mxu1 %v1603_v20  ;;  %v1036_v34 = vmul.f32 %v1027_v38, %v1014_v21  ;;  %v1037_v50 = vmul.f32 %v1031_v43, %v1018_v30  ;;  %1355 = vmatprep.subr.bf16.mxu0 %v1619_v25 }
 0x255   : > { %1356 = vmatpush1.bf16.msra.mxu0 %v1618_v42 }
 0x256   : > { %v1616_v11 = vpack.c.bf16 %v1036_v34, %v1034_v31  ;;  %v1617_v40 = vpack.c.bf16 %v1037_v50, %v1035_v27 }
 0x257   : > { %1331 = vmatpush2.bf16.msra.mxu1 %v1602_v57 }
 0x258   : > { %1332 = vmatprep.subr.bf16.mxu1 %v1601_v29  ;;  %1357 = vmatprep.subr.bf16.mxu0 %v1617_v40 }
 0x259   : > { %1358 = vmatpush1.bf16.msra.mxu0 %v1616_v11 }
 0x25b   : > { %1333 = vmatpush2.bf16.msra.mxu1 %v1600_v44 }
 0x25c   : > { %1543 = vmatmul.mubr.msk.bf16.vlgmr.msra.gmra.mxu0 %vm1298_vm10, %v1645_v56 }
 0x25e   : > { %1335 = vmatmul.mubr.bf16.vlgmr.msra.gmra.mxu1 %v1504_v0 }
 0x31c   : > { %v1377_v53 = vpop.f32.mrf.mxu0 }
 0x31e   : > { %v1336_v7 = vpop.f32.mrf.mxu1  ;;  %v1379_v9 = vpop.f32.mrf.mxu0 }
 0x31f   : > { %v1378_v13 = vadd.f32 %v1377_v53, %v1336_v7 }
 0x320   : > { %v1338_v18 = vpop.f32.mrf.mxu1  ;;  %v1381_v43 = vpop.f32.mrf.mxu0 }
 0x321   : > { %1384 = vst [vmem:[%s278_s14] sm:$0xff] %v1378_v13  ;;  %v1380_v37 = vadd.f32 %v1379_v9, %v1338_v18 }
 0x322   : > { %v1340_v38 = vpop.f32.mrf.mxu1  ;;  %v1382_v26 = vpop.f32.mrf.mxu0 }
 0x323   : > { %1385 = vst [vmem:[%s278_s14 + $0x8] sm:$0xff] %v1380_v37 }
 0x324   : > { %v1341_v1 = vpop.f32.mrf.mxu1 }
 0x325 PF: > { %s17_s24 = sadd.s32 1, %s1652_s24  }
 0x326   : > { %p14_p4 = scmp.ge.s32.totalorder %s17_s24, 4  }
 0x328   :  { %16 = sbr.rel (!%p14_p4) target bundleno = 1 (0x1), region = 86 }

</bundles_post_ra>
